<compile_context>
chip_gen: v7x
topology: tpu7x:2x2x1
jax: 0.10.0
libtpu: 0.0.40
codegen_flags: <defaults>
</compile_context>

<pallas_src>
import functools

import jax
import jax.numpy as jnp
from jax.experimental import pallas as pl
from jax.experimental.pallas import tpu as pltpu


def _srl(v, k):
    # logical right shift on int32
    return jax.lax.shift_right_logical(v, jnp.int32(k))


def _sublayer_connection_kernel(seed_ref, x_ref, w_ref, b_ref, g_ref, beta_ref,
                                o_ref, *, eps: float, dropout_p: float):
    x = x_ref[...].astype(jnp.float32)                       # (tm, D)
    tm, d = x.shape

    # ---- LayerNorm (unbiased std, eps added to std — matches the reference module) ----
    mean = jnp.mean(x, axis=-1, keepdims=True)
    xc = x - mean
    var_unbiased = jnp.sum(xc * xc, axis=-1, keepdims=True) * (1.0 / (d - 1))
    inv_std = 1.0 / (jnp.sqrt(var_unbiased) + eps)            # (tm, 1): cheap per-row
    normed = (xc * inv_std) * g_ref[...] + beta_ref[...]      # (tm, D)

    # ---- sublayer: Linear(size, size) on the MXU, bf16 operands / f32 accumulate ----
    y = jnp.dot(normed.astype(jnp.bfloat16), w_ref[...],
                preferred_element_type=jnp.float32) + b_ref[...]

    # ---- dropout (training semantics, inverted scaling by 1/(1-p)) ----
    if dropout_p > 0.0:
        # Stateless counter-based hash (murmur3 fmix32 finalizer) over global element index.
        row0 = pl.program_id(0) * tm
        rows = jax.lax.broadcasted_iota(jnp.int32, y.shape, 0) + row0
        cols = jax.lax.broadcasted_iota(jnp.int32, y.shape, 1)
        z = rows * jnp.int32(d) + cols
        z = z * jnp.int32(-1640531527) + seed_ref[0] * jnp.int32(747796405)
        z = z ^ _srl(z, 16)
        z = z * jnp.int32(-2048144789)
        z = z ^ _srl(z, 13)
        z = z * jnp.int32(-1028477387)
        z = z ^ _srl(z, 16)
        # top 24 bits -> uniform in [0, 1)
        u = _srl(z, 8).astype(jnp.float32) * (1.0 / (1 << 24))
        scale = 1.0 / (1.0 - dropout_p)
        y = y * jnp.where(u >= dropout_p, jnp.float32(scale), jnp.float32(0.0))

    # ---- residual ----
    o_ref[...] = (x + y).astype(o_ref.dtype)


def sublayer_connection(x, w, b, gamma, beta, seed, *, eps=1e-6, dropout_p=0.1,
                        tile_tokens=None, out_dtype=None):
    """x: (B, S, D). Returns x + dropout(Linear(LayerNorm(x)))."""
    B, S, D = x.shape
    T = B * S
    out_dtype = x.dtype if out_dtype is None else out_dtype

    # Real token tile: at most 512 rows, multiple of 8 (f32 sublane).
    if tile_tokens is None:
        tile_tokens = min(512, T)
    tile_tokens = max(8, ((int(tile_tokens) + 7) // 8) * 8)
    num_tiles = pl.cdiv(T, tile_tokens)
    T_pad = num_tiles * tile_tokens

    x2 = x.reshape(T, D)
    if T_pad != T:
        x2 = jnp.pad(x2, ((0, T_pad - T), (0, 0)))

    w_bf16 = w.astype(jnp.bfloat16)
    b2 = b.reshape(1, D).astype(jnp.float32)
    g2 = gamma.reshape(1, D).astype(jnp.float32)
    beta2 = beta.reshape(1, D).astype(jnp.float32)
    seed_arr = jnp.asarray([seed], dtype=jnp.int32)

    kernel = functools.partial(_sublayer_connection_kernel,
                               eps=float(eps), dropout_p=float(dropout_p))

    out2 = pl.pallas_call(
        kernel,
        out_shape=jax.ShapeDtypeStruct((T_pad, D), out_dtype),
        grid=(num_tiles,),
        in_specs=[
            pl.BlockSpec(memory_space=pltpu.MemorySpace.SMEM),          # seed (scalar)
            pl.BlockSpec((tile_tokens, D), lambda i: (i, 0)),           # x tile
            pl.BlockSpec((D, D), lambda i: (0, 0)),                     # W (bf16, resident)
            pl.BlockSpec((1, D), lambda i: (0, 0)),                     # bias
            pl.BlockSpec((1, D), lambda i: (0, 0)),                     # gamma (a_2)
            pl.BlockSpec((1, D), lambda i: (0, 0)),                     # beta  (b_2)
        ],
        out_specs=pl.BlockSpec((tile_tokens, D), lambda i: (i, 0)),
        compiler_params=pltpu.CompilerParams(
            dimension_semantics=("parallel",),
            vmem_limit_bytes=64 * 1024 * 1024),
    )(seed_arr, x2, w_bf16, b2, g2, beta2)

    if T_pad != T:
        out2 = out2[:T]
    return out2.reshape(B, S, D)


def _reference(x, w, b, gamma, beta, eps):
    mean = jnp.mean(x, axis=-1, keepdims=True)
    xc = x - mean
    var = jnp.sum(xc * xc, axis=-1, keepdims=True) / (x.shape[-1] - 1)
    normed = gamma * xc / (jnp.sqrt(var) + eps) + beta
    return x + (normed @ w + b)


if __name__ == "__main__":
    # Small shapes consistent with the module's forward: (batch, seq, hidden)
    B, S, D = 2, 8, 128
    key = jax.random.PRNGKey(0)
    kx, kw, kb = jax.random.split(key, 3)

    x = jax.random.normal(kx, (B, S, D), dtype=jnp.float32)

    # LayerNorm params: a_2 = ones(D), b_2 = zeros(D); sublayer Linear(D, D).
    gamma = jnp.ones((D,), dtype=jnp.float32)
    beta = jnp.zeros((D,), dtype=jnp.float32)
    w = jax.random.normal(kw, (D, D), dtype=jnp.float32) * 0.02
    b = jax.random.normal(kb, (D,), dtype=jnp.float32) * 0.02

    # Eval-mode check (dropout disabled) against a pure-JAX reference.
    out_eval = sublayer_connection(x, w, b, gamma, beta, seed=0,
                                   eps=1e-6, dropout_p=0.0)
    jax.block_until_ready(out_eval)
    ref = _reference(x, w, b, gamma, beta, 1e-6)
    assert out_eval.shape == (B, S, D)
    assert jnp.allclose(out_eval, ref, rtol=5e-2, atol=3e-2), "mismatch vs reference"

    # Training-mode run (exercises the dropout path).
    out_train = sublayer_connection(x, w, b, gamma, beta, seed=0,
                                    eps=1e-6, dropout_p=0.1)
    jax.block_until_ready(out_train)
    assert out_train.shape == (B, S, D)
    assert bool(jnp.all(jnp.isfinite(out_train)))

    print("KERNEL_OK")
</pallas_src>

<mosaic_0001>
module attributes {stable_mosaic.version = 11 : i64} {
  func.func @_sublayer_connection_kernel(%arg0: i32, %arg1: memref<1xi32, #tpu.memory_space<smem>>, %arg2: memref<16x128xf32, #tpu.memory_space<vmem>>, %arg3: memref<128x128xbf16, #tpu.memory_space<vmem>>, %arg4: memref<1x128xf32, #tpu.memory_space<vmem>>, %arg5: memref<1x128xf32, #tpu.memory_space<vmem>>, %arg6: memref<1x128xf32, #tpu.memory_space<vmem>>, %arg7: memref<16x128xf32, #tpu.memory_space<vmem>>) attributes {dimension_semantics = [#tpu.dimension_semantics<parallel>], iteration_bounds = array<i64: 1>, scalar_prefetch = 0 : i64, scratch_operands = 0 : i64, tpu.core_type = #tpu.core_type<tc>, window_params = [{transform_indices = @transform_0, window_bounds = array<i64: 1>}, {transform_indices = @transform_1, window_bounds = array<i64: 16, 128>}, {pipeline_mode = #tpu.pipeline_mode<synchronous>, transform_indices = @transform_2, window_bounds = array<i64: 128, 128>}, {pipeline_mode = #tpu.pipeline_mode<synchronous>, transform_indices = @transform_3, window_bounds = array<i64: 1, 128>}, {pipeline_mode = #tpu.pipeline_mode<synchronous>, transform_indices = @transform_4, window_bounds = array<i64: 1, 128>}, {pipeline_mode = #tpu.pipeline_mode<synchronous>, transform_indices = @transform_5, window_bounds = array<i64: 1, 128>}, {transform_indices = @transform_6, window_bounds = array<i64: 16, 128>}]} {
    %c0 = arith.constant 0 : index
    %c0_0 = arith.constant 0 : index
    %0 = vector.load %arg2[%c0, %c0_0] : memref<16x128xf32, #tpu.memory_space<vmem>>, vector<16x128xf32>
    %cst = arith.constant dense<0.000000e+00> : vector<16xf32>
    %1 = vector.multi_reduction <add>, %0, %cst [1] : vector<16x128xf32> to vector<16xf32>
    %2 = vector.shape_cast %1 : vector<16xf32> to vector<16x1xf32>
    %cst_1 = arith.constant 1.280000e+02 : f32
    %3 = vector.broadcast %cst_1 : f32 to vector<16x1xf32>
    %4 = arith.divf %2, %3 : vector<16x1xf32>
    %5 = vector.broadcast %4 : vector<16x1xf32> to vector<16x128xf32>
    %6 = arith.subf %0, %5 : vector<16x128xf32>
    %7 = arith.mulf %6, %6 : vector<16x128xf32>
    %cst_2 = arith.constant dense<0.000000e+00> : vector<16xf32>
    %8 = vector.multi_reduction <add>, %7, %cst_2 [1] : vector<16x128xf32> to vector<16xf32>
    %9 = vector.shape_cast %8 : vector<16xf32> to vector<16x1xf32>
    %cst_3 = arith.constant 0.00787401571 : f32
    %10 = vector.broadcast %cst_3 : f32 to vector<16x1xf32>
    %11 = arith.mulf %9, %10 : vector<16x1xf32>
    %12 = math.sqrt %11 : vector<16x1xf32>
    %cst_4 = arith.constant 9.99999997E-7 : f32
    %13 = vector.broadcast %cst_4 : f32 to vector<16x1xf32>
    %14 = arith.addf %12, %13 : vector<16x1xf32>
    %cst_5 = arith.constant 1.000000e+00 : f32
    %15 = vector.broadcast %cst_5 : f32 to vector<16x1xf32>
    %16 = arith.divf %15, %14 : vector<16x1xf32>
    %17 = vector.broadcast %16 : vector<16x1xf32> to vector<16x128xf32>
    %18 = arith.mulf %6, %17 : vector<16x128xf32>
    %c0_6 = arith.constant 0 : index
    %c0_7 = arith.constant 0 : index
    %19 = vector.load %arg5[%c0_6, %c0_7] : memref<1x128xf32, #tpu.memory_space<vmem>>, vector<1x128xf32>
    %20 = vector.broadcast %19 : vector<1x128xf32> to vector<16x128xf32>
    %21 = arith.mulf %18, %20 : vector<16x128xf32>
    %c0_8 = arith.constant 0 : index
    %c0_9 = arith.constant 0 : index
    %22 = vector.load %arg6[%c0_8, %c0_9] : memref<1x128xf32, #tpu.memory_space<vmem>>, vector<1x128xf32>
    %23 = vector.broadcast %22 : vector<1x128xf32> to vector<16x128xf32>
    %24 = arith.addf %21, %23 : vector<16x128xf32>
    %25 = arith.truncf %24 : vector<16x128xf32> to vector<16x128xbf16>
    %c0_10 = arith.constant 0 : index
    %c0_11 = arith.constant 0 : index
    %26 = vector.load %arg3[%c0_10, %c0_11] : memref<128x128xbf16, #tpu.memory_space<vmem>>, vector<128x128xbf16>
    %cst_12 = arith.constant dense<0.000000e+00> : vector<16x128xf32>
    %27 = tpu.matmul %25, %26, %cst_12 {dimension_numbers = #tpu.dot_dimension_numbers<[1], [0], [0], [1], [0, 0, 1, 1], [], []>} : vector<16x128xbf16>, vector<128x128xbf16>, vector<16x128xf32> -> vector<16x128xf32>
    %c0_13 = arith.constant 0 : index
    %c0_14 = arith.constant 0 : index
    %28 = vector.load %arg4[%c0_13, %c0_14] : memref<1x128xf32, #tpu.memory_space<vmem>>, vector<1x128xf32>
    %29 = vector.broadcast %28 : vector<1x128xf32> to vector<16x128xf32>
    %30 = arith.addf %27, %29 : vector<16x128xf32>
    %31 = arith.addf %0, %30 : vector<16x128xf32>
    %c0_15 = arith.constant 0 : index
    %c0_16 = arith.constant 0 : index
    %32 = vector.load %arg7[%c0_15, %c0_16] : memref<16x128xf32, #tpu.memory_space<vmem>>, vector<16x128xf32>
    tpu.vector_store %arg7[%c0_15, %c0_16], %31 {strides = array<i32>} : memref<16x128xf32, #tpu.memory_space<vmem>>, vector<16x128xf32>,
    return
  }
  func.func @transform_0(%arg0: i32) -> i32 {
    %c0_i32 = arith.constant 0 : i32
    %c0_i32_0 = arith.constant 0 : i32
    return %c0_i32 : i32
  }
  func.func @transform_1(%arg0: i32) -> (i32, i32) {
    %c0_i32 = arith.constant 0 : i32
    %c0_i32_0 = arith.constant 0 : i32
    return %arg0, %c0_i32 : i32, i32
  }
  func.func @transform_2(%arg0: i32) -> (i32, i32) {
    %c0_i32 = arith.constant 0 : i32
    %c0_i32_0 = arith.constant 0 : i32
    %c0_i32_1 = arith.constant 0 : i32
    return %c0_i32, %c0_i32_0 : i32, i32
  }
  func.func @transform_3(%arg0: i32) -> (i32, i32) {
    %c0_i32 = arith.constant 0 : i32
    %c0_i32_0 = arith.constant 0 : i32
    %c0_i32_1 = arith.constant 0 : i32
    return %c0_i32, %c0_i32_0 : i32, i32
  }
  func.func @transform_4(%arg0: i32) -> (i32, i32) {
    %c0_i32 = arith.constant 0 : i32
    %c0_i32_0 = arith.constant 0 : i32
    %c0_i32_1 = arith.constant 0 : i32
    return %c0_i32, %c0_i32_0 : i32, i32
  }
  func.func @transform_5(%arg0: i32) -> (i32, i32) {
    %c0_i32 = arith.constant 0 : i32
    %c0_i32_0 = arith.constant 0 : i32
    %c0_i32_1 = arith.constant 0 : i32
    return %c0_i32, %c0_i32_0 : i32, i32
  }
  func.func @transform_6(%arg0: i32) -> (i32, i32) {
    %c0_i32 = arith.constant 0 : i32
    %c0_i32_0 = arith.constant 0 : i32
    return %arg0, %c0_i32 : i32, i32
  }
}

</mosaic_0001>

<bundles_post_ra>
// kernel: tpu_custom_call.1
= control target key start
LH: loop header
LB: loop body
LE: loop exit
PB: predicated region body
PF: predicated region fallthrough
CT: control target
= control target key end

     0   :  { %12 = vsyncpa [#allocation4], 0  ;;  %s626_s0 = inlined_call_operand.<no memory space> [shape: s32[1], index: 0, kind: input, shape index: {}]   ;;  %s627_s1 = inlined_call_operand.hbm [shape: f32[16,128], index: 1, kind: input, shape index: {}]   ;;  %s628_s2 = inlined_call_operand.hbm [shape: bf16[128,128], index: 2, kind: input, shape index: {}]   ;;  %s629_s3 = inlined_call_operand.hbm [shape: f32[1,128], index: 3, kind: input, shape index: {}]   ;;  %s630_s4 = inlined_call_operand.hbm [shape: f32[1,128], index: 4, kind: input, shape index: {}]   ;;  %s631_s5 = inlined_call_operand.hbm [shape: f32[1,128], index: 5, kind: input, shape index: {}]   ;;  %s632_s6 = inlined_call_operand.hbm [shape: f32[16,128], index: 6, kind: output, shape index: {}]  }
   0x1   :  { %13 = vsyncpa [#allocation7], 0 }
   0x2   :  { %14 = vsyncpa [#allocation10], 0 }
   0x3   :  { %15 = vsyncpa [#allocation5], 0  ;;  %s491_s0 = smov [#allocation6]   ;;  %s351_s24 = scalar_lea.hbm %s628_s2, 1024 }
   0x4   :  { %s35_s21 = sshll.u32 %s491_s0, 4  ;;  %p352_p0 = scmp.ne.s32.totalorder %s628_s2, %s351_s24  ;;  %s36_s21 = int_to_ptr.vmem [resolvable:$true] %s35_s21 }
   0x5   :  { %p355_p1 = scmp.lt.u32.totalorder %s351_s24, %s628_s2 }
   0x7   :  { %p357_p2 = pnand %p355_p1, %p352_p0 }
   0x9   :  { %360 = shalt.err (!%p357_p2)
}
   0xa   :  { %s361_s29 = scalar_lea.vmem %s36_s21, 1024  ;;  %p366_p4 = scmp.lt.s32.totalorder %s36_s21, %s36_s21 }
   0xb   :  { %p362_p3 = scmp.ne.s32.totalorder %s36_s21, %s361_s29  ;;  %p367_p5 = scmp.lt.s32.totalorder %s361_s29, %s361_s29 }
   0xd   :  { %p368_p6 = por %p367_p5, %p366_p4 }
   0xf   :  { %p369_p7 = pnand %p368_p6, %p362_p3 }
  0x11   :  { %372 = shalt.err (!%p369_p7)
}
  0x12   :  { %s492_s30 = smov 64   ;;  %s493_s7 = smov 4  }
  0x13   :  { %41 = dma.hbm_to_vmem [thread:$0]  %s628_s2, 1024, %s36_s21, [#allocation7], %s492_s30, %s492_s30, %s493_s7  }
  0x14   :  { %s494_s10 = smov [#allocation9]   ;;  %s495_s12 = smov [#allocation3]  }
  0x15   :  { %s58_s11 = sshll.u32 %s494_s10, 4  ;;  %s23_s13 = sshll.u32 %s495_s12, 4  ;;  %s59_s11 = int_to_ptr.vmem [resolvable:$true] %s58_s11  ;;  %s24_s13 = int_to_ptr.vmem [resolvable:$true] %s23_s13 }
  0x16   :  { %s373_s16 = scalar_lea.hbm %s630_s4, 16 }
  0x17   :  { %p374_p8 = scmp.ne.s32.totalorder %s630_s4, %s373_s16  ;;  %p377_p9 = scmp.lt.u32.totalorder %s373_s16, %s630_s4 }
  0x19   :  { %p379_p10 = pnand %p377_p9, %p374_p8 }
  0x1b   :  { %382 = shalt.err (!%p379_p10)
}
  0x1c   :  { %s383_s2 = scalar_lea.vmem %s59_s11, 16  ;;  %s387_s0 = scalar_lea.vmem %s59_s11, 32 }
  0x1d   :  { %p384_p11 = scmp.ne.s32.totalorder %s59_s11, %s383_s2  ;;  %p388_p12 = scmp.lt.s32.totalorder %s59_s11, %s59_s11 }
  0x1e   :  { %p389_p13 = scmp.lt.s32.totalorder %s387_s0, %s383_s2 }
  0x20   :  { %p390_p0 = por %p389_p13, %p388_p12 }
  0x22   :  { %p391_p1 = pnand %p390_p0, %p384_p11 }
  0x24   :  { %394 = shalt.err (!%p391_p1)
}
  0x25   :  { %61 = dma.hbm_to_vmem [thread:$0]  %s630_s4, 16, %s59_s11, [#allocation10]  }
  0x26   :  { %s395_s25 = scalar_lea.hbm %s627_s1, 256 }
  0x27   :  { %p396_p2 = scmp.ne.s32.totalorder %s627_s1, %s395_s25  ;;  %p399_p3 = scmp.lt.u32.totalorder %s395_s25, %s627_s1 }
  0x29   :  { %p401_p4 = pnand %p399_p3, %p396_p2 }
  0x2b   :  { %404 = shalt.err (!%p401_p4)
}
  0x2c   :  { %s405_s30 = scalar_lea.vmem %s24_s13, 256  ;;  %p410_p6 = scmp.lt.s32.totalorder %s24_s13, %s24_s13 }
  0x2d   :  { %p406_p5 = scmp.ne.s32.totalorder %s24_s13, %s405_s30  ;;  %p411_p7 = scmp.lt.s32.totalorder %s405_s30, %s405_s30 }
  0x2f   :  { %p412_p8 = por %p411_p7, %p410_p6 }
  0x31   :  { %p413_p9 = pnand %p412_p8, %p406_p5 }
  0x33   :  { %416 = shalt.err (!%p413_p9)
}
  0x34   :  { %s496_s4 = smov 128   ;;  %s497_s7 = smov 8  }
  0x35   :  { %29 = dma.hbm_to_vmem [thread:$0]  %s627_s1, 256, %s24_s13, [#allocation4], %s496_s4, %s496_s4, %s497_s7  }
  0x36   :  { %s498_s10 = smov [#allocation8]   ;;  %s499_s12 = smov [#allocation11]  }
  0x37   :  { %s48_s11 = sshll.u32 %s498_s10, 4  ;;  %s68_s14 = sshll.u32 %s499_s12, 4  ;;  %s49_s11 = int_to_ptr.vmem [resolvable:$true] %s48_s11  ;;  %s69_s14 = int_to_ptr.vmem [resolvable:$true] %s68_s14 }
  0x38   :  { %s417_s17 = scalar_lea.hbm %s629_s3, 16 }
  0x39   :  { %p418_p10 = scmp.ne.s32.totalorder %s629_s3, %s417_s17  ;;  %p421_p11 = scmp.lt.u32.totalorder %s417_s17, %s629_s3 }
  0x3b   :  { %p423_p12 = pnand %p421_p11, %p418_p10 }
  0x3d   :  { %426 = shalt.err (!%p423_p12)
}
  0x3e   :  { %s427_s1 = scalar_lea.vmem %s49_s11, 16  ;;  %s431_s13 = scalar_lea.vmem %s49_s11, 32 }
  0x3f   :  { %p428_p13 = scmp.ne.s32.totalorder %s49_s11, %s427_s1  ;;  %p432_p0 = scmp.lt.s32.totalorder %s49_s11, %s49_s11 }
  0x40   :  { %p433_p1 = scmp.lt.s32.totalorder %s431_s13, %s427_s1 }
  0x42   :  { %p434_p2 = por %p433_p1, %p432_p0 }
  0x44   :  { %p435_p3 = pnand %p434_p2, %p428_p13 }
  0x46   :  { %438 = shalt.err (!%p435_p3)
}
  0x47   :  { %51 = dma.hbm_to_vmem [thread:$0]  %s629_s3, 16, %s49_s11, [#allocation7]  }
  0x48   :  { %s439_s24 = scalar_lea.hbm %s631_s5, 16 }
  0x49   :  { %p440_p4 = scmp.ne.s32.totalorder %s631_s5, %s439_s24  ;;  %p443_p5 = scmp.lt.u32.totalorder %s439_s24, %s631_s5 }
  0x4b   :  { %p445_p6 = pnand %p443_p5, %p440_p4 }
  0x4d   :  { %448 = shalt.err (!%p445_p6)
}
  0x4e   :  { %s449_s29 = scalar_lea.vmem %s69_s14, 16  ;;  %s453_s30 = scalar_lea.vmem %s69_s14, 32 }
  0x4f   :  { %p450_p7 = scmp.ne.s32.totalorder %s69_s14, %s449_s29  ;;  %p454_p8 = scmp.lt.s32.totalorder %s69_s14, %s69_s14 }
  0x50   :  { %p455_p9 = scmp.lt.s32.totalorder %s453_s30, %s449_s29 }
  0x52   :  { %p456_p10 = por %p455_p9, %p454_p8 }
  0x54   :  { %p457_p11 = pnand %p456_p10, %p450_p7 }
  0x56   :  { %460 = shalt.err (!%p457_p11)
}
  0x57   :  { %71 = dma.hbm_to_vmem [thread:$0]  %s631_s5, 16, %s69_s14, [#allocation10]  }
  0x58   :  { %483 = dma.done.wait [#allocation4], 256  }
  0x59   :  { %484 = vsyncadd [#allocation4], 4294967040 }
  0x5a   :  { %485 = dma.done.wait [#allocation7], 1040  }
  0x5b   :  { %486 = vsyncadd [#allocation7], 4294966256 }
  0x5c   :  { %487 = dma.done.wait [#allocation10], 32  }
  0x5d   :  { %488 = vsyncadd [#allocation10], 4294967264  ;;  %v601_v0 = vld [vmem:[#allocation3] sm:$0xff]  ;;  %v603_v1 = vld [vmem:[#allocation3 + $0x8] sm:$0xff]  ;;  %v500_v11 = vmov 0.0   ;;  %vm501_vm0 = vmmov 0  }
  0x5e   :  { %90 = vadd.xlane.f32.xlu0 %v601_v0  ;;  %v335_v10 = vld [vmem:[#allocation6] sm:$0xff]   ;;  %303 = vmatprep.subr.bf16.mxu0 %v500_v11  ;;  %v336_v12 = vld [vmem:[#allocation6 + $0x8] sm:$0xff]   ;;  %v337_v13 = vld [vmem:[#allocation6 + $0x10] sm:$0xff]   ;;  %s502_s5 = smov [#allocation12]  }
  0x5f   :  { %304 = vmatpush3.bf16.msra.mxu0 %v335_v10  ;;  %v338_v14 = vld [vmem:[#allocation6 + $0x18] sm:$0xff]   ;;  %v339_v15 = vld [vmem:[#allocation6 + $0x20] sm:$0xff]   ;;  %319 = vmatprep.mubr.msk.bf16.mxu0 %vm501_vm0, %v500_v11  ;;  %v340_v16 = vld [vmem:[#allocation6 + $0x28] sm:$0xff]   ;;  %s269_s9 = sshll.u32 %s502_s5, 4  ;;  %s270_s9 = int_to_ptr.vmem [resolvable:$true] %s269_s9 }
  0x60   :  { %305 = vmatprep.subr.bf16.mxu0 %v500_v11  ;;  %v341_v17 = vld [vmem:[#allocation6 + $0x30] sm:$0xff]   ;;  %v342_v18 = vld [vmem:[#allocation6 + $0x38] sm:$0xff]   ;;  %v283_v37 = vld [vmem:[#allocation9] ss:$0 sm:$0xff]  ;;  %s461_s10 = scalar_lea.vmem %s270_s9, 256  ;;  %p466_p13 = scmp.lt.s32.totalorder %s270_s9, %s270_s9 }
  0x61   :  { %v284_v41 = vld [vmem:[#allocation11] ss:$0 sm:$0xff]  ;;  %v285_v46 = vld [vmem:[#allocation8] ss:$0 sm:$0xff]  ;;  %p462_p12 = scmp.ne.s32.totalorder %s270_s9, %s461_s10  ;;  %p467_p0 = scmp.lt.s32.totalorder %s461_s10, %s461_s10 }
  0x62   :  { %92 = vadd.xlane.f32.xlu0 %v603_v1 }
  0x63   :  { %306 = vmatpush3.bf16.msra.mxu0 %v336_v12  ;;  %p468_p1 = por %p467_p0, %p466_p13 }
  0x64   :  { %307 = vmatprep.subr.bf16.mxu0 %v500_v11 }
  0x65   :  { %p469_p2 = pnand %p468_p1, %p462_p12 }
  0x67   :  { %308 = vmatpush3.bf16.msra.mxu0 %v337_v13 }
  0x68   :  { %309 = vmatprep.subr.bf16.mxu0 %v500_v11 }
  0x6b   :  { %310 = vmatpush3.bf16.msra.mxu0 %v338_v14 }
  0x6c   :  { %311 = vmatprep.subr.bf16.mxu0 %v500_v11 }
  0x6f   :  { %312 = vmatpush3.bf16.msra.mxu0 %v339_v15 }
  0x70   :  { %313 = vmatprep.subr.bf16.mxu0 %v500_v11 }
  0x73   :  { %314 = vmatpush3.bf16.msra.mxu0 %v340_v16 }
  0x74   :  { %315 = vmatprep.subr.bf16.mxu0 %v500_v11 }
  0x77   :  { %316 = vmatpush3.bf16.msra.mxu0 %v341_v17 }
  0x78   :  { %317 = vmatprep.subr.bf16.mxu0 %v500_v11 }
  0x7b   :  { %318 = vmatpush3.bf16.msra.mxu0 %v342_v18 }
  0xeb   :  { %v91_v2 = vpop.xlane.xlu0 %90 }
  0xec   :  { %v95_v3 = vmul.f32 0.0078125, %v91_v2 }
  0xee   :  { %v97_v4 = vsub.f32 %v601_v0, %v95_v3 }
  0xef   :  { %v93_v5 = vpop.xlane.xlu0 %92 }
  0xf0   :  { %v96_v6 = vmul.f32 0.0078125, %v93_v5  ;;  %v99_v7 = vmul.f32 %v97_v4, %v97_v4 }
  0xf2   :  { %v98_v8 = vsub.f32 %v603_v1, %v96_v6  ;;  %101 = vadd.xlane.f32.xlu1 %v99_v7 }
  0xf4   :  { %v100_v9 = vmul.f32 %v98_v8, %v98_v8 }
  0xf6   :  { %103 = vadd.xlane.f32.xlu1 %v100_v9 }
 0x17f   :  { %v102_v19 = vpop.xlane.xlu1 %101 }
 0x180   :  { %v105_v20 = vmul.f32 0.007874016, %v102_v19 }
 0x182   :  { %343 = vrsqrt.f32 %v105_v20  ;;  %vm109_vm1 = vcmp.eq.f32.partialorder %v105_v20, inf  ;;  %v112_v25 = vand.u32 2147483648, %v105_v20  ;;  %vm111_vm2 = vcmp.eq.f32.partialorder %v105_v20, 0.0 }
 0x183   :  { %v104_v21 = vpop.xlane.xlu1 %103 }
 0x184   :  { %v106_v22 = vmul.f32 0.007874016, %v104_v21 }
 0x186   :  { %345 = vrsqrt.f32 %v106_v22  ;;  %vm116_vm3 = vcmp.eq.f32.partialorder %v106_v22, inf  ;;  %v119_v31 = vand.u32 2147483648, %v106_v22  ;;  %vm118_vm4 = vcmp.eq.f32.partialorder %v106_v22, 0.0 }
 0x18c   :  { %v344_v23 = vpop.eup %343 }
 0x18d   :  { %v108_v24 = vmul.f32 %v344_v23, %v105_v20 }
 0x18f   :  { %v110_v26 = vsel %vm109_vm1, %v105_v20, %v108_v24 }
 0x190   :  { %v346_v27 = vpop.eup %345  ;;  %v113_v28 = vsel %vm111_vm2, %v112_v25, %v110_v26 }
 0x191   :  { %v121_v29 = vadd.f32 1e-06, %v113_v28  ;;  %v115_v30 = vmul.f32 %v346_v27, %v106_v22 }
 0x193   :  { %v117_v32 = vsel %vm116_vm3, %v106_v22, %v115_v30  ;;  %347 = vrcp.f32 %v121_v29 }
 0x194   :  { %v120_v33 = vsel %vm118_vm4, %v119_v31, %v117_v32 }
 0x195   :  { %v122_v34 = vadd.f32 1e-06, %v120_v33 }
 0x197   :  { %349 = vrcp.f32 %v122_v34 }
 0x19d   :  { %v348_v35 = vpop.eup %347 }
 0x19e   :  { %v127_v36 = vmul.f32 %v348_v35, %v97_v4 }
 0x1a0   :  { %v136_v40 = vmul.f32 %v283_v37, %v127_v36 }
 0x1a1   :  { %v350_v38 = vpop.eup %349 }
 0x1a2   :  { %v128_v39 = vmul.f32 %v350_v38, %v98_v8  ;;  %v145_v43 = vadd.f32 %v284_v41, %v136_v40 }
 0x1a4   :  { %v137_v42 = vmul.f32 %v283_v37, %v128_v39 }
 0x1a6   :  { %v146_v44 = vadd.f32 %v284_v41, %v137_v42 }
 0x1a8   :  { %v147_v45 = vpack.c.bf16 %v146_v44, %v145_v43 }
 0x1aa   :  { %320 = vmatmul.mubr.bf16.vlgmr.msra.gmra.mrb[0].mxu0 %v147_v45 }
 0x27d   :  { %v253_v47 = vpop.f32.mrb[0].mxu0 }
 0x27e   :  { %v254_v48 = vadd.f32 %v285_v46, %v253_v47  ;;  %v321_v49 = vpop.f32.mrb[1].mxu0 }
 0x27f   :  { %v256_v50 = vpop.f32.mrb[2].mxu0 }
 0x280   :  { %v260_v51 = vadd.f32 %v254_v48, %v601_v0  ;;  %v257_v52 = vadd.f32 %v285_v46, %v256_v50  ;;  %v322_v53 = vpop.f32.mrb[3].mxu0 }
 0x282   :  { %262 = vst [vmem:[#allocation12] sm:$0xff] %v260_v51  ;;  %v261_v54 = vadd.f32 %v257_v52, %v603_v1 }
 0x284   :  { %263 = vst [vmem:[#allocation12 + $0x8] sm:$0xff] %v261_v54 }
 0x285   :  { %472 = shalt.err (!%p469_p2)
}
 0x286   :  { %s473_s14 = scalar_lea.hbm %s632_s6, 256 }
 0x287   :  { %p474_p3 = scmp.ne.s32.totalorder %s632_s6, %s473_s14  ;;  %p477_p4 = scmp.lt.u32.totalorder %s473_s14, %s632_s6 }
 0x289   :  { %p479_p5 = pnand %p477_p4, %p474_p3 }
 0x28b   :  { %482 = shalt.err (!%p479_p5)
}
 0x28c   :  { %275 = dma.vmem_to_hbm [thread:$0]  %s270_s9, 256, %s632_s6, [#allocation5], %s496_s4, %s496_s4, %s497_s7  }
 0x28d   :  { %489 = dma.done.wait [#allocation5], 256  }
 0x28e   :  { %490 = vsyncadd [#allocation5], 4294967040 }
 0x28f   :  { %279 = vsyncpa [#allocation4], 1 }
 0x290   :  { %280 = vsyncpa [#allocation7], 1 }
 0x291   :  { %281 = vsyncpa [#allocation10], 1 }
 0x292   :  { %282 = vsyncpa [#allocation5], 1 }

</bundles_post_ra>
